<compile_context>
chip_gen: v6e
topology: v6e:2x2x1
jax: 0.10.0
libtpu: 0.0.40
codegen_flags: <defaults>
</compile_context>

<pallas_src>
import functools

import jax
import jax.numpy as jnp
from jax.experimental import pallas as pl
from jax.experimental.pallas import tpu as pltpu

LANE = 128


def _round_up(v, m):
    return ((v + m - 1) // m) * m


def sage_conv_kernel(adj_ref, x_k_ref, ws_ref, wn_ref, b_ref, out_ref,
                     agg_acc, self_x, *, deg_col):
    """Grid = (row_tiles, k_tiles); K (neighbor axis) is the reduction axis."""
    i = pl.program_id(0)
    k = pl.program_id(1)

    @pl.when(k == 0)
    def _init():
        agg_acc[...] = jnp.zeros_like(agg_acc)

    # bf16 0/1 adjacency straight into the dot (no explicit upcast / extra VMEM
    # copy); accumulation stays f32.  The ones-lane of x makes the MXU produce
    # the in-degree as a by-product (no per-step XLU row reduction).
    agg_acc[...] += jnp.dot(adj_ref[...], x_k_ref[...],
                            preferred_element_type=jnp.float32)

    # TM == TK, so the x block at k == i is exactly this row tile's self
    # features; capture it instead of streaming a third input.
    @pl.when(k == i)
    def _capture_self():
        self_x[...] = x_k_ref[...]

    @pl.when(k == pl.num_programs(1) - 1)
    def _finalize():
        agg = agg_acc[...]                                # (TM, Fp_in) f32
        deg = agg[:, deg_col:deg_col + 1]                 # MXU-computed in-degree
        deg_inv = 1.0 / jnp.maximum(deg, 1.0)             # exact (keeps 1e-4 tol)
        h_neigh = agg * deg_inv
        out = (jnp.dot(self_x[...], ws_ref[...],
                       preferred_element_type=jnp.float32)
               + jnp.dot(h_neigh, wn_ref[...],
                         preferred_element_type=jnp.float32)
               + b_ref[...])
        out_ref[...] = out.astype(out_ref.dtype)


def sage_conv(adj, x, w_self, w_neigh, bias, *, tile=512):
    """adj: (N, N) dense 0/1, x: (N, F_in), w_*: (F_in, F_out), bias: (F_out,)."""
    n, f_in = x.shape
    f_out = w_self.shape[1]

    # Feature padding: one extra lane is reserved for the "ones" degree column.
    fp_in = _round_up(f_in + 1, LANE)
    fp_out = _round_up(f_out, LANE)

    # Square tiles (TM == TK), lane-aligned, dividing the padded node count.
    tile = max(LANE, min(_round_up(tile, LANE), _round_up(n, LANE)))
    np_ = _round_up(n, tile)
    tm = tk = tile

    # Adjacency as bf16 (0/1 is exact): halves the dominant HBM stream.
    # TODO(synk): store adj pre-cast / tile-aligned upstream (fp8 on v7x) to
    # avoid this O(N^2) cast+pad pass for large graphs.
    adj_p = adj.astype(jnp.bfloat16)
    if np_ != n:
        adj_p = jnp.pad(adj_p, ((0, np_ - n), (0, np_ - n)))

    # Node features, padded, with a ones-lane at column f_in so the aggregation
    # matmul also yields the in-degree.  (Padded rows stay zero; their adj
    # columns are zero so they never contribute.)
    x_p = jnp.zeros((np_, fp_in), jnp.float32)
    x_p = x_p.at[:n, :f_in].set(x.astype(jnp.float32))
    x_p = x_p.at[:n, f_in].set(1.0)

    # Zero-padded weights; padded rows (incl. the ones-lane row) are zero, so
    # the extra lanes cannot leak into the output.
    ws_p = jnp.zeros((fp_in, fp_out), jnp.float32).at[:f_in, :f_out].set(
        w_self.astype(jnp.float32))
    wn_p = jnp.zeros((fp_in, fp_out), jnp.float32).at[:f_in, :f_out].set(
        w_neigh.astype(jnp.float32))
    b_p = jnp.zeros((1, fp_out), jnp.float32).at[0, :f_out].set(
        bias.astype(jnp.float32))

    grid = (np_ // tm, np_ // tk)

    # TODO(synk): at production widths, single-buffer the grid-invariant
    # W_self / W_neigh / bias blocks (pipeline_mode=pl.Buffered(1)) to reclaim
    # VMEM on v7x's 64 MiB.
    out_p = pl.pallas_call(
        functools.partial(sage_conv_kernel, deg_col=f_in),
        out_shape=jax.ShapeDtypeStruct((np_, fp_out), jnp.float32),
        grid_spec=pltpu.PrefetchScalarGridSpec(
            num_scalar_prefetch=0,
            grid=grid,
            in_specs=[
                pl.BlockSpec((tm, tk), lambda i, k: (i, k)),          # adj tile
                pl.BlockSpec((tk, fp_in), lambda i, k: (k, 0)),       # x rows (agg/self)
                pl.BlockSpec((fp_in, fp_out), lambda i, k: (0, 0)),   # W_self
                pl.BlockSpec((fp_in, fp_out), lambda i, k: (0, 0)),   # W_neigh
                pl.BlockSpec((1, fp_out), lambda i, k: (0, 0)),       # bias
            ],
            out_specs=pl.BlockSpec((tm, fp_out), lambda i, k: (i, 0)),
            scratch_shapes=[
                pltpu.VMEM((tm, fp_in), jnp.float32),   # aggregation accumulator
                pltpu.VMEM((tm, fp_in), jnp.float32),   # captured self features
            ],
        ),
        compiler_params=pltpu.CompilerParams(
            dimension_semantics=("parallel", "arbitrary"),
            vmem_limit_bytes=64 * 1024 * 1024),
    )(adj_p, x_p, ws_p, wn_p, b_p)

    return out_p[:n, :f_out]


def reference(adj, x, w_self, w_neigh, bias):
    deg = jnp.maximum(jnp.sum(adj, axis=1, keepdims=True), 1.0)
    h_neigh = (adj @ x) / deg
    return x @ w_self + h_neigh @ w_neigh + bias[None, :]


if __name__ == "__main__":
    key = jax.random.PRNGKey(0)
    N, IN_FEATS, OUT_FEATS = 256, 32, 32

    k_adj, k_x, k_ws, k_wn, k_b = jax.random.split(key, 5)

    # Deterministic random graph (dense adjacency, ~15% density, no self loops).
    adj = (jax.random.uniform(k_adj, (N, N)) < 0.15).astype(jnp.float32)
    adj = adj * (1.0 - jnp.eye(N, dtype=jnp.float32))

    x = jax.random.normal(k_x, (N, IN_FEATS), dtype=jnp.float32)

    # Parameters (PyTorch Linear weight is (out, in); we store (in, out)).
    scale = 1.0 / jnp.sqrt(jnp.float32(IN_FEATS))
    w_self = jax.random.uniform(k_ws, (IN_FEATS, OUT_FEATS),
                                minval=-scale, maxval=scale, dtype=jnp.float32)
    w_neigh = jax.random.uniform(k_wn, (IN_FEATS, OUT_FEATS),
                                 minval=-scale, maxval=scale, dtype=jnp.float32)
    bias = jax.random.uniform(k_b, (OUT_FEATS,),
                              minval=-scale, maxval=scale, dtype=jnp.float32)

    out = sage_conv(adj, x, w_self, w_neigh, bias)
    jax.block_until_ready(out)

    ref = reference(adj, x, w_self, w_neigh, bias)
    assert out.shape == (N, OUT_FEATS)
    assert jnp.allclose(out, ref, atol=1e-4, rtol=1e-4)

    print("KERNEL_OK")
</pallas_src>

<mosaic_0001>
module attributes {stable_mosaic.version = 11 : i64} {
  func.func @sage_conv_kernel(%arg0: i32, %arg1: i32, %arg2: memref<256x256xbf16, #tpu.memory_space<vmem>>, %arg3: memref<256x128xf32, #tpu.memory_space<vmem>>, %arg4: memref<128x128xf32, #tpu.memory_space<vmem>>, %arg5: memref<128x128xf32, #tpu.memory_space<vmem>>, %arg6: memref<1x128xf32, #tpu.memory_space<vmem>>, %arg7: memref<256x128xf32, #tpu.memory_space<vmem>>, %arg8: memref<256x128xf32, #tpu.memory_space<vmem>>, %arg9: memref<256x128xf32, #tpu.memory_space<vmem>>) attributes {dimension_semantics = [#tpu.dimension_semantics<parallel>, #tpu.dimension_semantics<arbitrary>], iteration_bounds = array<i64: 1, 1>, scalar_prefetch = 0 : i64, scratch_operands = 2 : i64, tpu.core_type = #tpu.core_type<tc>, window_params = [{transform_indices = @transform_0, window_bounds = array<i64: 256, 256>}, {transform_indices = @transform_1, window_bounds = array<i64: 256, 128>}, {pipeline_mode = #tpu.pipeline_mode<synchronous>, transform_indices = @transform_2, window_bounds = array<i64: 128, 128>}, {pipeline_mode = #tpu.pipeline_mode<synchronous>, transform_indices = @transform_3, window_bounds = array<i64: 128, 128>}, {pipeline_mode = #tpu.pipeline_mode<synchronous>, transform_indices = @transform_4, window_bounds = array<i64: 1, 128>}, {transform_indices = @transform_5, window_bounds = array<i64: 256, 128>}]} {
    %c0_i32 = arith.constant 0 : i32
    %0 = arith.cmpi eq, %arg1, %c0_i32 : i32
    %1 = arith.extui %0 : i1 to i32
    %c0_i32_0 = arith.constant 0 : i32
    %2 = arith.cmpi ne, %1, %c0_i32_0 : i32
    scf.if %2 {
      %cst_11 = arith.constant 0.000000e+00 : f32
      %15 = vector.broadcast %cst_11 : f32 to vector<256x128xf32>
      %c0_12 = arith.constant 0 : index
      %c0_13 = arith.constant 0 : index
      %16 = vector.load %arg8[%c0_12, %c0_13] : memref<256x128xf32, #tpu.memory_space<vmem>>, vector<256x128xf32>
      tpu.vector_store %arg8[%c0_12, %c0_13], %15 {strides = array<i32>} : memref<256x128xf32, #tpu.memory_space<vmem>>, vector<256x128xf32>,
    } else {
    }
    %c0 = arith.constant 0 : index
    %c0_1 = arith.constant 0 : index
    %3 = vector.load %arg8[%c0, %c0_1] : memref<256x128xf32, #tpu.memory_space<vmem>>, vector<256x128xf32>
    %c0_2 = arith.constant 0 : index
    %c0_3 = arith.constant 0 : index
    %4 = vector.load %arg2[%c0_2, %c0_3] : memref<256x256xbf16, #tpu.memory_space<vmem>>, vector<256x256xbf16>
    %c0_4 = arith.constant 0 : index
    %c0_5 = arith.constant 0 : index
    %5 = vector.load %arg3[%c0_4, %c0_5] : memref<256x128xf32, #tpu.memory_space<vmem>>, vector<256x128xf32>
    %cst = arith.constant dense<0.000000e+00> : vector<256x128xf32>
    %6 = tpu.matmul %4, %5, %cst {dimension_numbers = #tpu.dot_dimension_numbers<[1], [0], [0], [1], [0, 0, 1, 1], [], []>} : vector<256x256xbf16>, vector<256x128xf32>, vector<256x128xf32> -> vector<256x128xf32>
    %7 = arith.addf %3, %6 : vector<256x128xf32>
    %c0_6 = arith.constant 0 : index
    %c0_7 = arith.constant 0 : index
    %8 = vector.load %arg8[%c0_6, %c0_7] : memref<256x128xf32, #tpu.memory_space<vmem>>, vector<256x128xf32>
    tpu.vector_store %arg8[%c0_6, %c0_7], %7 {strides = array<i32>} : memref<256x128xf32, #tpu.memory_space<vmem>>, vector<256x128xf32>,
    %9 = arith.cmpi eq, %arg1, %arg0 : i32
    %10 = arith.extui %9 : i1 to i32
    %c0_i32_8 = arith.constant 0 : i32
    %11 = arith.cmpi ne, %10, %c0_i32_8 : i32
    scf.if %11 {
      %c0_11 = arith.constant 0 : index
      %c0_12 = arith.constant 0 : index
      %15 = vector.load %arg3[%c0_11, %c0_12] : memref<256x128xf32, #tpu.memory_space<vmem>>, vector<256x128xf32>
      %c0_13 = arith.constant 0 : index
      %c0_14 = arith.constant 0 : index
      %16 = vector.load %arg9[%c0_13, %c0_14] : memref<256x128xf32, #tpu.memory_space<vmem>>, vector<256x128xf32>
      tpu.vector_store %arg9[%c0_13, %c0_14], %15 {strides = array<i32>} : memref<256x128xf32, #tpu.memory_space<vmem>>, vector<256x128xf32>,
    } else {
    }
    %c0_i32_9 = arith.constant 0 : i32
    %12 = arith.cmpi eq, %arg1, %c0_i32_9 : i32
    %13 = arith.extui %12 : i1 to i32
    %c0_i32_10 = arith.constant 0 : i32
    %14 = arith.cmpi ne, %13, %c0_i32_10 : i32
    scf.if %14 {
      %c0_11 = arith.constant 0 : index
      %c0_12 = arith.constant 0 : index
      %15 = vector.load %arg8[%c0_11, %c0_12] : memref<256x128xf32, #tpu.memory_space<vmem>>, vector<256x128xf32>
      %16 = vector.extract_strided_slice %15 {offsets = [0, 32], sizes = [256, 1], strides = [1, 1]} : vector<256x128xf32> to vector<256x1xf32>
      %cst_13 = arith.constant 1.000000e+00 : f32
      %17 = vector.broadcast %cst_13 : f32 to vector<256x1xf32>
      %18 = arith.maximumf %16, %17 : vector<256x1xf32>
      %cst_14 = arith.constant 1.000000e+00 : f32
      %19 = vector.broadcast %cst_14 : f32 to vector<256x1xf32>
      %20 = arith.divf %19, %18 : vector<256x1xf32>
      %21 = vector.broadcast %20 : vector<256x1xf32> to vector<256x128xf32>
      %22 = arith.mulf %15, %21 : vector<256x128xf32>
      %c0_15 = arith.constant 0 : index
      %c0_16 = arith.constant 0 : index
      %23 = vector.load %arg9[%c0_15, %c0_16] : memref<256x128xf32, #tpu.memory_space<vmem>>, vector<256x128xf32>
      %c0_17 = arith.constant 0 : index
      %c0_18 = arith.constant 0 : index
      %24 = vector.load %arg4[%c0_17, %c0_18] : memref<128x128xf32, #tpu.memory_space<vmem>>, vector<128x128xf32>
      %cst_19 = arith.constant dense<0.000000e+00> : vector<256x128xf32>
      %25 = tpu.matmul %23, %24, %cst_19 {dimension_numbers = #tpu.dot_dimension_numbers<[1], [0], [0], [1], [0, 0, 1, 1], [], []>} : vector<256x128xf32>, vector<128x128xf32>, vector<256x128xf32> -> vector<256x128xf32>
      %c0_20 = arith.constant 0 : index
      %c0_21 = arith.constant 0 : index
      %26 = vector.load %arg5[%c0_20, %c0_21] : memref<128x128xf32, #tpu.memory_space<vmem>>, vector<128x128xf32>
      %cst_22 = arith.constant dense<0.000000e+00> : vector<256x128xf32>
      %27 = tpu.matmul %22, %26, %cst_22 {dimension_numbers = #tpu.dot_dimension_numbers<[1], [0], [0], [1], [0, 0, 1, 1], [], []>} : vector<256x128xf32>, vector<128x128xf32>, vector<256x128xf32> -> vector<256x128xf32>
      %28 = arith.addf %25, %27 : vector<256x128xf32>
      %c0_23 = arith.constant 0 : index
      %c0_24 = arith.constant 0 : index
      %29 = vector.load %arg6[%c0_23, %c0_24] : memref<1x128xf32, #tpu.memory_space<vmem>>, vector<1x128xf32>
      %30 = vector.broadcast %29 : vector<1x128xf32> to vector<256x128xf32>
      %31 = arith.addf %28, %30 : vector<256x128xf32>
      %c0_25 = arith.constant 0 : index
      %c0_26 = arith.constant 0 : index
      %32 = vector.load %arg7[%c0_25, %c0_26] : memref<256x128xf32, #tpu.memory_space<vmem>>, vector<256x128xf32>
      tpu.vector_store %arg7[%c0_25, %c0_26], %31 {strides = array<i32>} : memref<256x128xf32, #tpu.memory_space<vmem>>, vector<256x128xf32>,
    } else {
    }
    return
  }
  func.func @transform_0(%arg0: i32, %arg1: i32) -> (i32, i32) {
    %c0_i32 = arith.constant 0 : i32
    return %arg0, %arg1 : i32, i32
  }
  func.func @transform_1(%arg0: i32, %arg1: i32) -> (i32, i32) {
    %c0_i32 = arith.constant 0 : i32
    %c0_i32_0 = arith.constant 0 : i32
    return %arg1, %c0_i32 : i32, i32
  }
  func.func @transform_2(%arg0: i32, %arg1: i32) -> (i32, i32) {
    %c0_i32 = arith.constant 0 : i32
    %c0_i32_0 = arith.constant 0 : i32
    %c0_i32_1 = arith.constant 0 : i32
    return %c0_i32, %c0_i32_0 : i32, i32
  }
  func.func @transform_3(%arg0: i32, %arg1: i32) -> (i32, i32) {
    %c0_i32 = arith.constant 0 : i32
    %c0_i32_0 = arith.constant 0 : i32
    %c0_i32_1 = arith.constant 0 : i32
    return %c0_i32, %c0_i32_0 : i32, i32
  }
  func.func @transform_4(%arg0: i32, %arg1: i32) -> (i32, i32) {
    %c0_i32 = arith.constant 0 : i32
    %c0_i32_0 = arith.constant 0 : i32
    %c0_i32_1 = arith.constant 0 : i32
    return %c0_i32, %c0_i32_0 : i32, i32
  }
  func.func @transform_5(%arg0: i32, %arg1: i32) -> (i32, i32) {
    %c0_i32 = arith.constant 0 : i32
    %c0_i32_0 = arith.constant 0 : i32
    return %arg0, %c0_i32 : i32, i32
  }
}

</mosaic_0001>

<bundles_post_ra>
// kernel: tpu_custom_call.1
= control target key start
LH: loop header
LB: loop body
LE: loop exit
PB: predicated region body
PF: predicated region fallthrough
CT: control target
= control target key end

     0   :  { %10 = vsyncpa [#allocation5], 0  ;;  %s2584_s0 = inlined_call_operand.hbm [shape: bf16[256,256], index: 0, kind: input, shape index: {}]   ;;  %s2585_s1 = inlined_call_operand.hbm [shape: f32[256,128], index: 1, kind: input, shape index: {}]   ;;  %s2586_s2 = inlined_call_operand.hbm [shape: f32[128,128], index: 2, kind: input, shape index: {}]   ;;  %s2587_s3 = inlined_call_operand.hbm [shape: f32[128,128], index: 3, kind: input, shape index: {}]   ;;  %s2588_s4 = inlined_call_operand.vmem [shape: f32[1,128], index: 4, kind: input, shape index: {}]   ;;  %s2589_s5 = inlined_call_operand.hbm [shape: f32[256,128], index: 5, kind: output, shape index: {}]  }
   0x1   :  { %11 = vsyncpa [#allocation8], 0 }
   0x2   :  { %12 = vsyncpa [#allocation11], 0 }
   0x3   :  { %13 = vsyncpa [#allocation6], 0  ;;  %s2269_s18 = smov [#allocation7]   ;;  %s2270_s20 = smov [#allocation4]  }
   0x4   :  { %s31_s19 = sshll.u32 %s2269_s18, 4  ;;  %s19_s21 = sshll.u32 %s2270_s20, 4  ;;  %s32_s19 = int_to_ptr.vmem [resolvable:$true] %s31_s19  ;;  %s20_s21 = int_to_ptr.vmem [resolvable:$true] %s19_s21 }
   0x5   :  { %s2169_s22 = scalar_lea.vmem %s32_s19, 4096  ;;  %p2174_p1 = scmp.lt.s32.totalorder %s32_s19, %s32_s19 }
   0x6   :  { %p2170_p0 = scmp.ne.s32.totalorder %s32_s19, %s2169_s22  ;;  %p2175_p2 = scmp.lt.s32.totalorder %s2169_s22, %s2169_s22 }
   0x8   :  { %p2176_p3 = por %p2175_p2, %p2174_p1 }
   0xa   :  { %p2177_p4 = pnand %p2176_p3, %p2170_p0 }
   0xc   :  { %2180 = shalt.err (!%p2177_p4)
}
   0xd   :  { %s2271_s23 = smov 128   ;;  %s2272_s24 = smov 8  }
   0xe   :  { %37 = dma.hbm_to_vmem [thread:$0]  %s2585_s1, 4096, %s32_s19, [#allocation8], %s2271_s23, %s2271_s23, %s2272_s24  }
   0xf   :  { %s2189_s27 = scalar_lea.vmem %s20_s21, 4096  ;;  %p2194_p6 = scmp.lt.s32.totalorder %s20_s21, %s20_s21 }
  0x10   :  { %p2190_p5 = scmp.ne.s32.totalorder %s20_s21, %s2189_s27  ;;  %p2195_p7 = scmp.lt.s32.totalorder %s2189_s27, %s2189_s27 }
  0x12   :  { %p2196_p8 = por %p2195_p7, %p2194_p6 }
  0x14   :  { %p2197_p9 = pnand %p2196_p8, %p2190_p5 }
  0x16   :  { %2200 = shalt.err (!%p2197_p9)
}
  0x17   :  { %25 = dma.hbm_to_vmem [thread:$0]  %s2584_s0, 4096, %s20_s21, [#allocation5], %s2271_s23, %s2271_s23, %s2272_s24  }
  0x18   :  { %s2273_s30 = smov [#allocation9]   ;;  %s2274_s7 = smov [#allocation10]  }
  0x19   :  { %s43_s6 = sshll.u32 %s2273_s30, 4  ;;  %s55_s8 = sshll.u32 %s2274_s7, 4  ;;  %s44_s6 = int_to_ptr.vmem [resolvable:$true] %s43_s6  ;;  %s56_s8 = int_to_ptr.vmem [resolvable:$true] %s55_s8 }
  0x1a   :  { %s2209_s1 = scalar_lea.vmem %s44_s6, 2048  ;;  %p2214_p11 = scmp.lt.s32.totalorder %s44_s6, %s44_s6 }
  0x1b   :  { %p2210_p10 = scmp.ne.s32.totalorder %s44_s6, %s2209_s1  ;;  %p2215_p12 = scmp.lt.s32.totalorder %s2209_s1, %s2209_s1 }
  0x1d   :  { %p2216_p13 = por %p2215_p12, %p2214_p11 }
  0x1f   :  { %p2217_p0 = pnand %p2216_p13, %p2210_p10 }
  0x21   :  { %2220 = shalt.err (!%p2217_p0)
}
  0x22   :  { %49 = dma.hbm_to_vmem [thread:$0]  %s2586_s2, 2048, %s44_s6, [#allocation8], %s2271_s23, %s2271_s23, %s2272_s24  }
  0x23   :  { %s2229_s0 = scalar_lea.vmem %s56_s8, 2048  ;;  %p2234_p2 = scmp.lt.s32.totalorder %s56_s8, %s56_s8 }
  0x24   :  { %p2230_p1 = scmp.ne.s32.totalorder %s56_s8, %s2229_s0  ;;  %p2235_p3 = scmp.lt.s32.totalorder %s2229_s0, %s2229_s0 }
  0x26   :  { %p2236_p4 = por %p2235_p3, %p2234_p2 }
  0x28   :  { %p2237_p5 = pnand %p2236_p4, %p2230_p1 }
  0x2a   :  { %2240 = shalt.err (!%p2237_p5)
}
  0x2b   :  { %61 = dma.hbm_to_vmem [thread:$0]  %s2587_s3, 2048, %s56_s8, [#allocation11], %s2271_s23, %s2271_s23, %s2272_s24  }
  0x2c   :  { %2261 = dma.done.wait [#allocation5], 4096  }
  0x2d   :  { %2262 = vsyncadd [#allocation5], 4294963200 }
  0x2e   :  { %2263 = dma.done.wait [#allocation8], 6144  }
  0x2f   :  { %2264 = vsyncadd [#allocation8], 4294961152 }
  0x30   :  { %2265 = dma.done.wait [#allocation11], 2048  }
  0x31   :  { %2266 = vsyncadd [#allocation11], 4294965248  ;;  %v207_v0 = vld [vmem:[#allocation7 + $0xf8] sm:$0xff]  ;;  %v206_v2 = vld [vmem:[#allocation7 + $0xf0] sm:$0xff]  ;;  %v2275_v56 = vmov 32  }
  0x32   :  { %v191_v1 = vld [vmem:[#allocation7 + $0x78] sm:$0xff]  ;;  %1653 = vmatprep.subr.mxu0 %v207_v0  ;;  %v190_v3 = vld [vmem:[#allocation7 + $0x70] sm:$0xff]  ;;  %v205_v4 = vld [vmem:[#allocation7 + $0xe8] sm:$0xff]  ;;  %2045 = vset.pattern.permute.xlu0 %v2275_v56 }
  0x33   :  { %1654 = vmatpush3.msra.mxu0 %v191_v1  ;;  %v189_v5 = vld [vmem:[#allocation7 + $0x68] sm:$0xff]  ;;  %v204_v6 = vld [vmem:[#allocation7 + $0xe0] sm:$0xff]  ;;  %v203_v8 = vld [vmem:[#allocation7 + $0xd8] sm:$0xff]  ;;  %2046 = vset.pattern.permute.xlu1 %v2275_v56 }
  0x34   :  { %1655 = vmatprep.subr.mxu0 %v206_v2  ;;  %v188_v7 = vld [vmem:[#allocation7 + $0x60] sm:$0xff]  ;;  %v187_v9 = vld [vmem:[#allocation7 + $0x58] sm:$0xff]  ;;  %v202_v10 = vld [vmem:[#allocation7 + $0xd0] sm:$0xff] }
  0x35   :  { %1656 = vmatpush3.msra.mxu0 %v190_v3  ;;  %v186_v11 = vld [vmem:[#allocation7 + $0x50] sm:$0xff]  ;;  %v201_v12 = vld [vmem:[#allocation7 + $0xc8] sm:$0xff]  ;;  %v200_v15 = vld [vmem:[#allocation7 + $0xc0] sm:$0xff] }
  0x36   :  { %1657 = vmatprep.subr.mxu0 %v205_v4  ;;  %v185_v13 = vld [vmem:[#allocation7 + $0x48] sm:$0xff]  ;;  %v184_v16 = vld [vmem:[#allocation7 + $0x40] sm:$0xff]  ;;  %v199_v17 = vld [vmem:[#allocation7 + $0xb8] sm:$0xff] }
  0x37   :  { %1658 = vmatpush3.msra.mxu0 %v189_v5  ;;  %v2049_v14 = vld [vmem:[#allocation4 + $0x4] ss:$8 sps:$4 sm:$0xff]   ;;  %v183_v18 = vld [vmem:[#allocation7 + $0x38] sm:$0xff]  ;;  %v198_v19 = vld [vmem:[#allocation7 + $0xb0] sm:$0xff] }
  0x38   :  { %1659 = vmatprep.subr.mxu0 %v204_v6  ;;  %432 = vmatprep.mubr.bf16.mxu0 %v2049_v14  ;;  %v182_v20 = vld [vmem:[#allocation7 + $0x30] sm:$0xff]  ;;  %v197_v21 = vld [vmem:[#allocation7 + $0xa8] sm:$0xff]  ;;  %v196_v23 = vld [vmem:[#allocation7 + $0xa0] sm:$0xff] }
  0x39   :  { %1660 = vmatpush3.msra.mxu0 %v188_v7  ;;  %v181_v22 = vld [vmem:[#allocation7 + $0x28] sm:$0xff]  ;;  %v180_v24 = vld [vmem:[#allocation7 + $0x20] sm:$0xff]  ;;  %v195_v25 = vld [vmem:[#allocation7 + $0x98] sm:$0xff] }
  0x3a   :  { %1661 = vmatprep.subr.mxu0 %v203_v8  ;;  %v179_v26 = vld [vmem:[#allocation7 + $0x18] sm:$0xff]  ;;  %v194_v27 = vld [vmem:[#allocation7 + $0x90] sm:$0xff]  ;;  %v193_v29 = vld [vmem:[#allocation7 + $0x88] sm:$0xff] }
  0x3b   :  { %1662 = vmatpush3.msra.mxu0 %v187_v9  ;;  %v2331_v28 = vld [vmem:[#allocation7 + $0x10] sm:$0xff]  ;;  %v2333_v30 = vld [vmem:[#allocation7 + $0x8] sm:$0xff]  ;;  %v192_v31 = vld [vmem:[#allocation7 + $0x80] sm:$0xff] }
  0x3c   :  { %1663 = vmatprep.subr.mxu0 %v202_v10  ;;  %v2336_v32 = vld [vmem:[#allocation7] sm:$0xff]  ;;  %v2050_v34 = vld [vmem:[#allocation4 + $0x14] ss:$8 sps:$4 sm:$0xff]   ;;  %v2052_v35 = vld [vmem:[#allocation4 + $0x10] ss:$8 sps:$4 sm:$0xff]  }
  0x3d   :  { %1664 = vmatpush3.msra.mxu0 %v186_v11  ;;  %v2047_v33 = vld [vmem:[#allocation4] ss:$8 sps:$4 sm:$0xff]   ;;  %v2053_v36 = vld [vmem:[#allocation4 + $0x24] ss:$8 sps:$4 sm:$0xff]   ;;  %v2056_v38 = vld [vmem:[#allocation4 + $0x34] ss:$8 sps:$4 sm:$0xff]  }
  0x3e   :  { %1665 = vmatprep.subr.mxu0 %v201_v12  ;;  %v2055_v37 = vld [vmem:[#allocation4 + $0x20] ss:$8 sps:$4 sm:$0xff]   ;;  %v2058_v39 = vld [vmem:[#allocation4 + $0x30] ss:$8 sps:$4 sm:$0xff]   ;;  %v2059_v40 = vld [vmem:[#allocation4 + $0x44] ss:$8 sps:$4 sm:$0xff]  }
  0x3f   :  { %1666 = vmatpush3.msra.mxu0 %v185_v13  ;;  %v2061_v41 = vld [vmem:[#allocation4 + $0x40] ss:$8 sps:$4 sm:$0xff]   ;;  %v2062_v42 = vld [vmem:[#allocation4 + $0x54] ss:$8 sps:$4 sm:$0xff]   ;;  %v2064_v43 = vld [vmem:[#allocation4 + $0x50] ss:$8 sps:$4 sm:$0xff]  }
  0x40   :  { %1667 = vmatprep.subr.mxu0 %v200_v15  ;;  %v2065_v44 = vld [vmem:[#allocation4 + $0x64] ss:$8 sps:$4 sm:$0xff]   ;;  %v2067_v45 = vld [vmem:[#allocation4 + $0x60] ss:$8 sps:$4 sm:$0xff]   ;;  %v2068_v46 = vld [vmem:[#allocation4 + $0x74] ss:$8 sps:$4 sm:$0xff]  }
  0x41   :  { %1668 = vmatpush3.msra.mxu0 %v184_v16  ;;  %v2070_v47 = vld [vmem:[#allocation4 + $0x70] ss:$8 sps:$4 sm:$0xff]   ;;  %v2071_v48 = vld [vmem:[#allocation4 + $0x84] ss:$8 sps:$4 sm:$0xff]   ;;  %v2073_v49 = vld [vmem:[#allocation4 + $0x80] ss:$8 sps:$4 sm:$0xff]  }
  0x42   :  { %1669 = vmatprep.subr.mxu0 %v199_v17  ;;  %v2074_v50 = vld [vmem:[#allocation4 + $0x94] ss:$8 sps:$4 sm:$0xff]   ;;  %v2076_v51 = vld [vmem:[#allocation4 + $0x90] ss:$8 sps:$4 sm:$0xff]   ;;  %v2077_v52 = vld [vmem:[#allocation4 + $0xa4] ss:$8 sps:$4 sm:$0xff]  }
  0x43   :  { %1670 = vmatpush3.msra.mxu0 %v183_v18  ;;  %v2079_v53 = vld [vmem:[#allocation4 + $0xa0] ss:$8 sps:$4 sm:$0xff]   ;;  %v2080_v54 = vld [vmem:[#allocation4 + $0xb4] ss:$8 sps:$4 sm:$0xff]   ;;  %v2082_v55 = vld [vmem:[#allocation4 + $0xb0] ss:$8 sps:$4 sm:$0xff]  }
  0x44   :  { %1671 = vmatprep.subr.mxu0 %v198_v19  ;;  %v2083_v57 = vld [vmem:[#allocation4 + $0xc4] ss:$8 sps:$4 sm:$0xff]   ;;  %v2085_v58 = vld [vmem:[#allocation4 + $0xc0] ss:$8 sps:$4 sm:$0xff]   ;;  %v2086_v59 = vld [vmem:[#allocation4 + $0xd4] ss:$8 sps:$4 sm:$0xff]  }
  0x45   :  { %1672 = vmatpush3.msra.mxu0 %v182_v20  ;;  %v2088_v60 = vld [vmem:[#allocation4 + $0xd0] ss:$8 sps:$4 sm:$0xff]   ;;  %v2089_v61 = vld [vmem:[#allocation4 + $0xe4] ss:$8 sps:$4 sm:$0xff]   ;;  %v2091_v62 = vld [vmem:[#allocation4 + $0xe0] ss:$8 sps:$4 sm:$0xff]  }
  0x46   :  { %1673 = vmatprep.subr.mxu0 %v197_v21  ;;  %v2092_v63 = vld [vmem:[#allocation4 + $0xf4] ss:$8 sps:$4 sm:$0xff]   ;;  %v2094_v0 = vld [vmem:[#allocation4 + $0xf0] ss:$8 sps:$4 sm:$0xff]   ;;  %v1077_v3 = vld [vmem:[#allocation10 + $0x68] sm:$0xff] }
  0x47   :  { %1674 = vmatpush3.msra.mxu0 %v181_v22  ;;  %v1079_v1 = vld [vmem:[#allocation10 + $0x78] sm:$0xff]  ;;  %v1078_v2 = vld [vmem:[#allocation10 + $0x70] sm:$0xff]  ;;  %v1076_v4 = vld [vmem:[#allocation10 + $0x60] sm:$0xff] }
  0x48   :  { %1675 = vmatprep.subr.mxu0 %v196_v23  ;;  %1877 = vmatprep.subr.mxu1 %v1079_v1  ;;  %v1075_v5 = vld [vmem:[#allocation10 + $0x58] sm:$0xff]  ;;  %v1074_v7 = vld [vmem:[#allocation10 + $0x50] sm:$0xff]  ;;  %v1073_v9 = vld [vmem:[#allocation10 + $0x48] sm:$0xff] }
  0x49   :  { %1676 = vmatpush3.msra.mxu0 %v180_v24  ;;  %1878 = vmatpush3.msra.mxu1 %v1079_v1  ;;  %v1072_v11 = vld [vmem:[#allocation10 + $0x40] sm:$0xff]  ;;  %v1071_v14 = vld [vmem:[#allocation10 + $0x38] sm:$0xff]  ;;  %v1070_v16 = vld [vmem:[#allocation10 + $0x30] sm:$0xff] }
  0x4a   :  { %1677 = vmatprep.subr.mxu0 %v195_v25  ;;  %1879 = vmatprep.subr.mxu1 %v1078_v2  ;;  %v1069_v20 = vld [vmem:[#allocation10 + $0x28] sm:$0xff]  ;;  %v1068_v22 = vld [vmem:[#allocation10 + $0x20] sm:$0xff] }
  0x4b   :  { %1678 = vmatpush3.msra.mxu0 %v179_v26  ;;  %1880 = vmatpush3.msra.mxu1 %v1078_v2  ;;  %v1067_v26 = vld [vmem:[#allocation10 + $0x18] sm:$0xff] }
  0x4c   :  { %1679 = vmatprep.subr.mxu0 %v194_v27  ;;  %1881 = vmatprep.subr.mxu1 %v1077_v3 }
  0x4d   :  { %1680 = vmatpush3.msra.mxu0 %v2331_v28  ;;  %1882 = vmatpush3.msra.mxu1 %v1077_v3 }
  0x4e   :  { %1681 = vmatprep.subr.mxu0 %v193_v29  ;;  %1883 = vmatprep.subr.mxu1 %v1076_v4 }
  0x4f   :  { %1682 = vmatpush3.msra.mxu0 %v2333_v30  ;;  %1884 = vmatpush3.msra.mxu1 %v1076_v4 }
  0x50   :  { %1683 = vmatprep.subr.mxu0 %v192_v31  ;;  %1885 = vmatprep.subr.mxu1 %v1075_v5 }
  0x51   :  { %1684 = vmatpush3.msra.mxu0 %v2336_v32  ;;  %1886 = vmatpush3.msra.mxu1 %v1075_v5 }
  0x52   :  { %433 = vmatmul.mubr.bf16.vlgmr.msra.gmra.mxu0 %v2047_v33  ;;  %1887 = vmatprep.subr.mxu1 %v1074_v7  ;;  %v1066_v33 = vld [vmem:[#allocation10 + $0x10] sm:$0xff] }
  0x53   :  { %440 = vmatprep.mubr.bf16.mxu0 %v2050_v34  ;;  %1888 = vmatpush3.msra.mxu1 %v1074_v7 }
  0x54   :  { %1889 = vmatprep.subr.mxu1 %v1073_v9 }
  0x55   :  { %1890 = vmatpush3.msra.mxu1 %v1073_v9 }
  0x56   :  { %1891 = vmatprep.subr.mxu1 %v1072_v11 }
  0x57   :  { %1892 = vmatpush3.msra.mxu1 %v1072_v11 }
  0x58   :  { %1893 = vmatprep.subr.mxu1 %v1071_v14 }
  0x59   :  { %1894 = vmatpush3.msra.mxu1 %v1071_v14 }
  0x5a   :  { %441 = vmatmul.mubr.bf16.gmra.mxu0 %v2052_v35  ;;  %1895 = vmatprep.subr.mxu1 %v1070_v16  ;;  %v1065_v35 = vld [vmem:[#allocation10 + $0x8] sm:$0xff] }
  0x5b   :  { %448 = vmatprep.mubr.bf16.mxu0 %v2053_v36  ;;  %1896 = vmatpush3.msra.mxu1 %v1070_v16 }
  0x5c   :  { %1897 = vmatprep.subr.mxu1 %v1069_v20 }
  0x5d   :  { %1898 = vmatpush3.msra.mxu1 %v1069_v20 }
  0x5e   :  { %1899 = vmatprep.subr.mxu1 %v1068_v22 }
  0x5f   :  { %1900 = vmatpush3.msra.mxu1 %v1068_v22 }
  0x60   :  { %1901 = vmatprep.subr.mxu1 %v1067_v26 }
  0x61   :  { %1902 = vmatpush3.msra.mxu1 %v1067_v26 }
  0x62   :  { %449 = vmatmul.mubr.bf16.gmra.mxu0 %v2055_v37  ;;  %1903 = vmatprep.subr.mxu1 %v1066_v33 }
  0x63   :  { %456 = vmatprep.mubr.bf16.mxu0 %v2056_v38  ;;  %1904 = vmatpush3.msra.mxu1 %v1066_v33 }
  0x64   :  { %1905 = vmatprep.subr.mxu1 %v1065_v35 }
  0x65   :  { %1906 = vmatpush3.msra.mxu1 %v1065_v35 }
  0x6a   :  { %457 = vmatmul.mubr.bf16.gmra.mxu0 %v2058_v39 }
  0x6b   :  { %464 = vmatprep.mubr.bf16.mxu0 %v2059_v40  ;;  %v1064_v40 = vld [vmem:[#allocation10] sm:$0xff] }
  0x6c   :  { %1907 = vmatprep.subr.mxu1 %v1064_v40 }
  0x6d   :  { %1908 = vmatpush3.msra.mxu1 %v1064_v40 }
  0x72   :  { %465 = vmatmul.mubr.bf16.gmra.mxu0 %v2061_v41 }
  0x73   :  { %472 = vmatprep.mubr.bf16.mxu0 %v2062_v42 }
  0x7a   :  { %473 = vmatmul.mubr.bf16.gmra.mxu0 %v2064_v43 }
  0x7b   :  { %480 = vmatprep.mubr.bf16.mxu0 %v2065_v44 }
  0x82   :  { %481 = vmatmul.mubr.bf16.gmra.mxu0 %v2067_v45 }
  0x83   :  { %488 = vmatprep.mubr.bf16.mxu0 %v2068_v46 }
  0x8a   :  { %489 = vmatmul.mubr.bf16.gmra.mxu0 %v2070_v47 }
  0x8b   :  { %496 = vmatprep.mubr.bf16.mxu0 %v2071_v48 }
  0x92   :  { %497 = vmatmul.mubr.bf16.gmra.mxu0 %v2073_v49 }
  0x93   :  { %504 = vmatprep.mubr.bf16.mxu0 %v2074_v50 }
  0x9a   :  { %505 = vmatmul.mubr.bf16.gmra.mxu0 %v2076_v51 }
  0x9b   :  { %512 = vmatprep.mubr.bf16.mxu0 %v2077_v52 }
  0xa2   :  { %513 = vmatmul.mubr.bf16.gmra.mxu0 %v2079_v53 }
  0xa3   :  { %520 = vmatprep.mubr.bf16.mxu0 %v2080_v54 }
  0xaa   :  { %521 = vmatmul.mubr.bf16.gmra.mxu0 %v2082_v55 }
  0xab   :  { %528 = vmatprep.mubr.bf16.mxu0 %v2083_v57 }
  0xb2   :  { %529 = vmatmul.mubr.bf16.gmra.mxu0 %v2085_v58 }
  0xb3   :  { %536 = vmatprep.mubr.bf16.mxu0 %v2086_v59 }
  0xba   :  { %537 = vmatmul.mubr.bf16.gmra.mxu0 %v2088_v60 }
  0xbb   :  { %544 = vmatprep.mubr.bf16.mxu0 %v2089_v61 }
  0xc2   :  { %545 = vmatmul.mubr.bf16.gmra.mxu0 %v2091_v62 }
  0xc3   :  { %552 = vmatprep.mubr.bf16.mxu0 %v2092_v63 }
  0xca   :  { %553 = vmatmul.mubr.bf16.gmra.mxu0 %v2094_v0 }
 0x112   :  { %v1685_v6 = vpop.f32.mrf.mxu0 }
 0x114   :  { %v1686_v8 = vpop.f32.mrf.mxu0 }
 0x115   :  { %v2340_v10 = vadd.f32 %v1686_v8, %v1685_v6 }
 0x116   :  { %v1688_v12 = vpop.f32.mrf.mxu0 }
 0x117   :  { %v728_v13 = vmax.f32 %v2340_v10, 1.0 }
 0x118   :  { %v1689_v15 = vpop.f32.mrf.mxu0 }
 0x119   :  { %2095 = vrcp.f32 %v728_v13  ;;  %v2343_v17 = vadd.f32 %v1689_v15, %v1688_v12 }
 0x11a   :  { %v1691_v18 = vpop.f32.mrf.mxu0 }
 0x11b   :  { %v729_v19 = vmax.f32 %v2343_v17, 1.0 }
 0x11c   :  { %v1692_v21 = vpop.f32.mrf.mxu0 }
 0x11d   :  { %2097 = vrcp.f32 %v729_v19  ;;  %v2346_v23 = vadd.f32 %v1692_v21, %v1691_v18 }
 0x11e   :  { %v1694_v24 = vpop.f32.mrf.mxu0 }
 0x11f   :  { %v730_v25 = vmax.f32 %v2346_v23, 1.0 }
 0x120   :  { %v1695_v27 = vpop.f32.mrf.mxu0 }
 0x121   :  { %2099 = vrcp.f32 %v730_v25  ;;  %v2349_v29 = vadd.f32 %v1695_v27, %v1694_v24 }
 0x122   :  { %v1697_v31 = vpop.f32.mrf.mxu0 }
 0x123   :  { %v731_v34 = vmax.f32 %v2349_v29, 1.0 }
 0x124   :  { %v1698_v36 = vpop.f32.mrf.mxu0 }
 0x125   :  { %2101 = vrcp.f32 %v731_v34  ;;  %v2352_v37 = vadd.f32 %v1698_v36, %v1697_v31 }
 0x126   :  { %v2096_v38 = vpop.eup %2095  ;;  %v1700_v39 = vpop.f32.mrf.mxu0 }
 0x127   :  { %v732_v41 = vmax.f32 %v2352_v37, 1.0  ;;  %826 = vperm.xlu0 %2045, %v2096_v38  }
 0x128   :  { %v1701_v42 = vpop.f32.mrf.mxu0 }
 0x129   :  { %2103 = vrcp.f32 %v732_v41  ;;  %v2355_v43 = vadd.f32 %v1701_v42, %v1700_v39 }
 0x12a   :  { %v2098_v44 = vpop.eup %2097  ;;  %v1703_v45 = vpop.f32.mrf.mxu0 }
 0x12b   :  { %v733_v46 = vmax.f32 %v2355_v43, 1.0  ;;  %831 = vperm.xlu0 %2045, %v2098_v44  }
 0x12c   :  { %v1704_v47 = vpop.f32.mrf.mxu0 }
 0x12d   :  { %2105 = vrcp.f32 %v733_v46  ;;  %v2358_v48 = vadd.f32 %v1704_v47, %v1703_v45 }
 0x12e   :  { %v2100_v49 = vpop.eup %2099  ;;  %v1706_v50 = vpop.f32.mrf.mxu0 }
 0x12f   :  { %v734_v51 = vmax.f32 %v2358_v48, 1.0  ;;  %836 = vperm.xlu1 %2046, %v2100_v49  }
 0x130   :  { %v1707_v52 = vpop.f32.mrf.mxu0 }
 0x131   :  { %2107 = vrcp.f32 %v734_v51  ;;  %v2361_v53 = vadd.f32 %v1707_v52, %v1706_v50 }
 0x132   :  { %v2102_v54 = vpop.eup %2101  ;;  %v1709_v55 = vpop.f32.mrf.mxu0 }
 0x133   :  { %v735_v56 = vmax.f32 %v2361_v53, 1.0  ;;  %841 = vperm.xlu1 %2046, %v2102_v54  }
 0x134   :  { %v1710_v57 = vpop.f32.mrf.mxu0 }
 0x135   :  { %2109 = vrcp.f32 %v735_v56  ;;  %v2364_v58 = vadd.f32 %v1710_v57, %v1709_v55 }
 0x136   :  { %v2104_v59 = vpop.eup %2103  ;;  %v1712_v60 = vpop.f32.mrf.mxu0 }
 0x137   :  { %v736_v61 = vmax.f32 %v2364_v58, 1.0  ;;  %846 = vperm.xlu0 %2045, %v2104_v59  }
 0x138   :  { %v1713_v62 = vpop.f32.mrf.mxu0 }
 0x139   :  { %2111 = vrcp.f32 %v736_v61  ;;  %v2367_v63 = vadd.f32 %v1713_v62, %v1712_v60 }
 0x13a   :  { %v2106_v0 = vpop.eup %2105  ;;  %v1715_v1 = vpop.f32.mrf.mxu0 }
 0x13b   :  { %v737_v2 = vmax.f32 %v2367_v63, 1.0  ;;  %851 = vperm.xlu1 %2046, %v2106_v0  }
 0x13c   :  { %v1716_v3 = vpop.f32.mrf.mxu0 }
 0x13d   :  { %2113 = vrcp.f32 %v737_v2  ;;  %v2370_v4 = vadd.f32 %v1716_v3, %v1715_v1  ;;  %v2400_v2 = vld [vmem:[#allocation9 + $0x78] sm:$0xff] }
 0x13e   :  { %v2108_v5 = vpop.eup %2107  ;;  %v1718_v6 = vpop.f32.mrf.mxu0  ;;  %1957 = vmatprep.subr.mxu1 %v2400_v2 }
 0x13f   :  { %v738_v7 = vmax.f32 %v2370_v4, 1.0  ;;  %856 = vperm.xlu0 %2045, %v2108_v5  }
 0x140   :  { %v1719_v8 = vpop.f32.mrf.mxu0 }
 0x141   :  { %2115 = vrcp.f32 %v738_v7  ;;  %v2373_v9 = vadd.f32 %v1719_v8, %v1718_v6 }
 0x142   :  { %v2110_v11 = vpop.eup %2109  ;;  %v1721_v12 = vpop.f32.mrf.mxu0 }
 0x143   :  { %v739_v13 = vmax.f32 %v2373_v9, 1.0  ;;  %861 = vperm.xlu1 %2046, %v2110_v11  }
 0x144   :  { %v1722_v14 = vpop.f32.mrf.mxu0 }
 0x145   :  { %2117 = vrcp.f32 %v739_v13  ;;  %v2376_v15 = vadd.f32 %v1722_v14, %v1721_v12 }
 0x146   :  { %v2112_v16 = vpop.eup %2111  ;;  %v1724_v18 = vpop.f32.mrf.mxu0 }
 0x147   :  { %v740_v19 = vmax.f32 %v2376_v15, 1.0  ;;  %866 = vperm.xlu0 %2045, %v2112_v16  }
 0x148   :  { %v1725_v20 = vpop.f32.mrf.mxu0 }
 0x149   :  { %2119 = vrcp.f32 %v740_v19  ;;  %v2379_v21 = vadd.f32 %v1725_v20, %v1724_v18 }
 0x14a   :  { %v2114_v22 = vpop.eup %2113  ;;  %v1727_v24 = vpop.f32.mrf.mxu0 }
 0x14b   :  { %v741_v25 = vmax.f32 %v2379_v21, 1.0  ;;  %871 = vperm.xlu1 %2046, %v2114_v22  }
 0x14c   :  { %v1728_v26 = vpop.f32.mrf.mxu0 }
 0x14d   :  { %2121 = vrcp.f32 %v741_v25  ;;  %v2382_v27 = vadd.f32 %v1728_v26, %v1727_v24 }
 0x14e   :  { %v2116_v31 = vpop.eup %2115  ;;  %v1730_v33 = vpop.f32.mrf.mxu0 }
 0x14f   :  { %v742_v34 = vmax.f32 %v2382_v27, 1.0  ;;  %876 = vperm.xlu0 %2045, %v2116_v31  }
 0x150   :  { %v1731_v35 = vpop.f32.mrf.mxu0 }
 0x151   :  { %2123 = vrcp.f32 %v742_v34  ;;  %v2385_v36 = vadd.f32 %v1731_v35, %v1730_v33 }
 0x152   :  { %v2118_v38 = vpop.eup %2117  ;;  %v1733_v39 = vpop.f32.mrf.mxu0 }
 0x153   :  { %v743_v40 = vmax.f32 %v2385_v36, 1.0  ;;  %881 = vperm.xlu1 %2046, %v2118_v38  }
 0x154   :  { %v1734_v41 = vpop.f32.mrf.mxu0 }
 0x155   :  { %2125 = vrcp.f32 %v743_v40  ;;  %v2388_v42 = vadd.f32 %v1734_v41, %v1733_v39 }
 0x156   :  { %v2120_v44 = vpop.eup %2119  ;;  %v1736_v45 = vpop.f32.mrf.mxu0 }
 0x157   :  { %v744_v46 = vmax.f32 %v2388_v42, 1.0  ;;  %886 = vperm.xlu0 %2045, %v2120_v44  }
 0x158   :  { %v1737_v47 = vpop.f32.mrf.mxu0 }
 0x159   :  { %2127 = vrcp.f32 %v744_v46  ;;  %v2391_v49 = vadd.f32 %v1737_v47, %v1736_v45 }
 0x15a   :  { %v2122_v50 = vpop.eup %2121  ;;  %v1739_v51 = vpop.f32.mrf.mxu0 }
 0x15b   :  { %v745_v52 = vmax.f32 %v2391_v49, 1.0  ;;  %891 = vperm.xlu1 %2046, %v2122_v50  }
 0x15c   :  { %v1740_v54 = vpop.f32.mrf.mxu0 }
 0x15d   :  { %2129 = vrcp.f32 %v745_v52  ;;  %v2394_v55 = vadd.f32 %v1740_v54, %v1739_v51 }
 0x15e   :  { %v2124_v56 = vpop.eup %2123  ;;  %v1742_v57 = vpop.f32.mrf.mxu0 }
 0x15f   :  { %v746_v59 = vmax.f32 %v2394_v55, 1.0  ;;  %896 = vperm.xlu0 %2045, %v2124_v56  }
 0x160   :  { %v1743_v60 = vpop.f32.mrf.mxu0 }
 0x161   :  { %2131 = vrcp.f32 %v746_v59  ;;  %v2397_v61 = vadd.f32 %v1743_v60, %v1742_v57 }
 0x162   :  { %v2126_v62 = vpop.eup %2125  ;;  %v1745_v0 = vpop.f32.mrf.mxu0 }
 0x163   :  { %v747_v1 = vmax.f32 %v2397_v61, 1.0  ;;  %901 = vperm.xlu1 %2046, %v2126_v62  }
 0x164   :  { %v1746_v3 = vpop.f32.mrf.mxu0 }
 0x165   :  { %2133 = vrcp.f32 %v747_v1  ;;  %v2403_v5 = vadd.f32 %v1746_v3, %v1745_v0 }
 0x166   :  { %v2128_v6 = vpop.eup %2127  ;;  %v1748_v7 = vpop.f32.mrf.mxu0 }
 0x167   :  { %v748_v8 = vmax.f32 %v2403_v5, 1.0  ;;  %906 = vperm.xlu0 %2045, %v2128_v6  }
 0x168   :  { %v1749_v11 = vpop.f32.mrf.mxu0 }
 0x169   :  { %2135 = vrcp.f32 %v748_v8  ;;  %v2406_v12 = vadd.f32 %v1749_v11, %v1748_v7 }
 0x16a   :  { %v2130_v13 = vpop.eup %2129  ;;  %v1751_v14 = vpop.f32.mrf.mxu0 }
 0x16b   :  { %v749_v16 = vmax.f32 %v2406_v12, 1.0  ;;  %911 = vperm.xlu1 %2046, %v2130_v13  }
 0x16c   :  { %v1752_v18 = vpop.f32.mrf.mxu0 }
 0x16d   :  { %2137 = vrcp.f32 %v749_v16  ;;  %v2409_v19 = vadd.f32 %v1752_v18, %v1751_v14 }
 0x16e   :  { %v2132_v20 = vpop.eup %2131  ;;  %v1754_v22 = vpop.f32.mrf.mxu0 }
 0x16f   :  { %v750_v24 = vmax.f32 %v2409_v19, 1.0  ;;  %916 = vperm.xlu0 %2045, %v2132_v20  }
 0x170   :  { %v1755_v25 = vpop.f32.mrf.mxu0 }
 0x171   :  { %2139 = vrcp.f32 %v750_v24  ;;  %v2412_v26 = vadd.f32 %v1755_v25, %v1754_v22 }
 0x172   :  { %v2134_v31 = vpop.eup %2133  ;;  %v1757_v33 = vpop.f32.mrf.mxu0 }
 0x173   :  { %v751_v34 = vmax.f32 %v2412_v26, 1.0  ;;  %921 = vperm.xlu1 %2046, %v2134_v31  }
 0x174   :  { %v1758_v35 = vpop.f32.mrf.mxu0 }
 0x175   :  { %2141 = vrcp.f32 %v751_v34  ;;  %v2415_v38 = vadd.f32 %v1758_v35, %v1757_v33 }
 0x176   :  { %v2136_v39 = vpop.eup %2135  ;;  %v1760_v40 = vpop.f32.mrf.mxu0 }
 0x177   :  { %v752_v41 = vmax.f32 %v2415_v38, 1.0  ;;  %926 = vperm.xlu0 %2045, %v2136_v39  }
 0x178   :  { %v1761_v44 = vpop.f32.mrf.mxu0 }
 0x179   :  { %2143 = vrcp.f32 %v752_v41  ;;  %v2418_v45 = vadd.f32 %v1761_v44, %v1760_v40 }
 0x17a   :  { %v2138_v46 = vpop.eup %2137  ;;  %v1763_v47 = vpop.f32.mrf.mxu0 }
 0x17b   :  { %v753_v50 = vmax.f32 %v2418_v45, 1.0  ;;  %931 = vperm.xlu1 %2046, %v2138_v46  }
 0x17c   :  { %v1764_v51 = vpop.f32.mrf.mxu0 }
 0x17d   :  { %2145 = vrcp.f32 %v753_v50  ;;  %v2421_v52 = vadd.f32 %v1764_v51, %v1763_v47 }
 0x17e   :  { %v2140_v54 = vpop.eup %2139  ;;  %v1766_v56 = vpop.f32.mrf.mxu0 }
 0x17f   :  { %v754_v57 = vmax.f32 %v2421_v52, 1.0  ;;  %936 = vperm.xlu0 %2045, %v2140_v54  }
 0x180   :  { %v1767_v59 = vpop.f32.mrf.mxu0 }
 0x181   :  { %2147 = vrcp.f32 %v754_v57  ;;  %v2424_v60 = vadd.f32 %v1767_v59, %v1766_v56  ;;  %v1062_v57 = vld [vmem:[#allocation9 + $0x70] sm:$0xff] }
 0x182   :  { %v2142_v62 = vpop.eup %2141  ;;  %v1769_v0 = vpop.f32.mrf.mxu0 }
 0x183   :  { %v755_v1 = vmax.f32 %v2424_v60, 1.0  ;;  %941 = vperm.xlu1 %2046, %v2142_v62   ;;  %v1061_v62 = vld [vmem:[#allocation9 + $0x68] sm:$0xff] }
 0x184   :  { %v1770_v3 = vpop.f32.mrf.mxu0 }
 0x185   :  { %2149 = vrcp.f32 %v755_v1  ;;  %v2427_v6 = vadd.f32 %v1770_v3, %v1769_v0  ;;  %v1060_v1 = vld [vmem:[#allocation9 + $0x60] sm:$0xff] }
 0x186   :  { %v2144_v7 = vpop.eup %2143  ;;  %v1772_v8 = vpop.f32.mrf.mxu0 }
 0x187   :  { %v756_v11 = vmax.f32 %v2427_v6, 1.0  ;;  %946 = vperm.xlu0 %2045, %v2144_v7  }
 0x188   :  { %v1773_v13 = vpop.f32.mrf.mxu0 }
 0x189   :  { %2151 = vrcp.f32 %v756_v11  ;;  %v2430_v14 = vadd.f32 %v1773_v13, %v1772_v8  ;;  %v1056_v11 = vld [vmem:[#allocation9 + $0x40] sm:$0xff] }
 0x18a   :  { %v2146_v16 = vpop.eup %2145  ;;  %v1775_v18 = vpop.f32.mrf.mxu0 }
 0x18b   :  { %v757_v20 = vmax.f32 %v2430_v14, 1.0  ;;  %951 = vperm.xlu1 %2046, %v2146_v16   ;;  %v1055_v16 = vld [vmem:[#allocation9 + $0x38] sm:$0xff] }
 0x18c   :  { %v1776_v22 = vpop.f32.mrf.mxu0 }
 0x18d   :  { %2153 = vrcp.f32 %v757_v20  ;;  %v2433_v24 = vadd.f32 %v1776_v22, %v1775_v18  ;;  %v1054_v18 = vld [vmem:[#allocation9 + $0x30] sm:$0xff]  ;;  %v1053_v22 = vld [vmem:[#allocation9 + $0x28] sm:$0xff] }
 0x18e   :  { %v2148_v25 = vpop.eup %2147  ;;  %v1778_v31 = vpop.f32.mrf.mxu0 }
 0x18f   :  { %v758_v33 = vmax.f32 %v2433_v24, 1.0  ;;  %956 = vperm.xlu0 %2045, %v2148_v25   ;;  %v1052_v25 = vld [vmem:[#allocation9 + $0x20] sm:$0xff] }
 0x190   :  { %v1779_v34 = vpop.f32.mrf.mxu0 }
 0x191   :  { %2155 = vrcp.f32 %v758_v33  ;;  %v2436_v35 = vadd.f32 %v1779_v34, %v1778_v31  ;;  %v1051_v33 = vld [vmem:[#allocation9 + $0x18] sm:$0xff]  ;;  %v1050_v34 = vld [vmem:[#allocation9 + $0x10] sm:$0xff] }
 0x192   :  { %v2150_v39 = vpop.eup %2149 }
 0x193   :  { %v759_v40 = vmax.f32 %v2436_v35, 1.0  ;;  %961 = vperm.xlu1 %2046, %v2150_v39  }
 0x195   :  { %2157 = vrcp.f32 %v759_v40  ;;  %v1049_v40 = vld [vmem:[#allocation9 + $0x8] sm:$0xff] }
 0x196   :  { %v2152_v41 = vpop.eup %2151 }
 0x197   :  { %966 = vperm.xlu0 %2045, %v2152_v41   ;;  %v1048_v41 = vld [vmem:[#allocation9] sm:$0xff] }
 0x19a   :  { %v2154_v44 = vpop.eup %2153 }
 0x19b   :  { %971 = vperm.xlu1 %2046, %v2154_v44  }
 0x19e   :  { %v2156_v46 = vpop.eup %2155 }
 0x19f   :  { %976 = vperm.xlu0 %2045, %v2156_v46  }
 0x1a2   :  { %v2158_v47 = vpop.eup %2157  ;;  %v827_v50 = vpop.permute.xlu0 %826 }
 0x1a3   :  { %981 = vperm.xlu1 %2046, %v2158_v47   ;;  %v984_v51 = vmul.f32 %v2340_v10, %v827_v50  ;;  %v1059_v10 = vld [vmem:[#allocation9 + $0x58] sm:$0xff] }
 0x1a5   :  { %1909 = vmatprep.mubr.f32.mxu1 %v984_v51 }
 0x1a6   :  { %v832_v54 = vpop.permute.xlu0 %831 }
 0x1a7   :  { %v985_v56 = vmul.f32 %v2343_v17, %v832_v54  ;;  %v1058_v17 = vld [vmem:[#allocation9 + $0x50] sm:$0xff] }
 0x1a9   :  { %1910 = vmatmul.mubr.f32.vlgmr.msra.gmra.mxu1 %v985_v56 }
 0x1aa   :  { %v837_v59 = vpop.permute.xlu1 %836  ;;  %1958 = vmatpush3.msra.mxu1 %v2400_v2  ;;  %v1057_v2 = vld [vmem:[#allocation9 + $0x48] sm:$0xff] }
 0x1ab   :  { %v986_v0 = vmul.f32 %v2346_v23, %v837_v59  ;;  %1959 = vmatprep.subr.mxu1 %v1062_v57 }
 0x1ac   :  { %1960 = vmatpush3.msra.mxu1 %v1062_v57 }
 0x1ad   :  { %1912 = vmatprep.mubr.f32.mxu1 %v986_v0  ;;  %1961 = vmatprep.subr.mxu1 %v1061_v62 }
 0x1ae   :  { %v842_v3 = vpop.permute.xlu1 %841  ;;  %1962 = vmatpush3.msra.mxu1 %v1061_v62 }
 0x1af   :  { %v987_v7 = vmul.f32 %v2349_v29, %v842_v3  ;;  %1963 = vmatprep.subr.mxu1 %v1060_v1 }
 0x1b0   :  { %1964 = vmatpush3.msra.mxu1 %v1060_v1 }
 0x1b1   :  { %1913 = vmatmul.mubr.f32.gmra.mxu1 %v987_v7  ;;  %1965 = vmatprep.subr.mxu1 %v1059_v10 }
 0x1b2   :  { %v847_v8 = vpop.permute.xlu0 %846  ;;  %1966 = vmatpush3.msra.mxu1 %v1059_v10 }
 0x1b3   :  { %v988_v23 = vmul.f32 %v2352_v37, %v847_v8  ;;  %1967 = vmatprep.subr.mxu1 %v1058_v17 }
 0x1b4   :  { %1968 = vmatpush3.msra.mxu1 %v1058_v17 }
 0x1b5   :  { %1915 = vmatprep.mubr.f32.mxu1 %v988_v23  ;;  %1969 = vmatprep.subr.mxu1 %v1057_v2 }
 0x1b6   :  { %v852_v13 = vpop.permute.xlu1 %851  ;;  %1970 = vmatpush3.msra.mxu1 %v1057_v2 }
 0x1b7   :  { %v989_v29 = vmul.f32 %v2355_v43, %v852_v13  ;;  %1971 = vmatprep.subr.mxu1 %v1056_v11 }
 0x1b8   :  { %1972 = vmatpush3.msra.mxu1 %v1056_v11 }
 0x1b9   :  { %1916 = vmatmul.mubr.f32.gmra.mxu1 %v989_v29  ;;  %1973 = vmatprep.subr.mxu1 %v1055_v16 }
 0x1ba   :  { %v857_v20 = vpop.permute.xlu0 %856  ;;  %1974 = vmatpush3.msra.mxu1 %v1055_v16 }
 0x1bb   :  { %v990_v37 = vmul.f32 %v2358_v48, %v857_v20  ;;  %1975 = vmatprep.subr.mxu1 %v1054_v18 }
 0x1bc   :  { %1976 = vmatpush3.msra.mxu1 %v1054_v18 }
 0x1bd   :  { %1918 = vmatprep.mubr.f32.mxu1 %v990_v37  ;;  %1977 = vmatprep.subr.mxu1 %v1053_v22  ;;  %v635_v37 = vld [vmem:[#allocation7 + $0x30] sm:$0xff] }
 0x1be   :  { %v862_v31 = vpop.permute.xlu1 %861  ;;  %1978 = vmatpush3.msra.mxu1 %v1053_v22 }
 0x1bf   :  { %v991_v43 = vmul.f32 %v2361_v53, %v862_v31  ;;  %1979 = vmatprep.subr.mxu1 %v1052_v25  ;;  %v639_v31 = vld [vmem:[#allocation7 + $0x50] sm:$0xff] }
 0x1c0   :  { %1980 = vmatpush3.msra.mxu1 %v1052_v25  ;;  %v637_v25 = vld [vmem:[#allocation7 + $0x40] sm:$0xff] }
 0x1c1   :  { %1919 = vmatmul.mubr.f32.gmra.mxu1 %v991_v43  ;;  %1981 = vmatprep.subr.mxu1 %v1051_v33  ;;  %v644_v43 = vld [vmem:[#allocation7 + $0x78] sm:$0xff] }
 0x1c2   :  { %v867_v39 = vpop.permute.xlu0 %866  ;;  %1982 = vmatpush3.msra.mxu1 %v1051_v33  ;;  %v643_v33 = vld [vmem:[#allocation7 + $0x70] sm:$0xff] }
 0x1c3   :  { %v992_v48 = vmul.f32 %v2364_v58, %v867_v39  ;;  %1983 = vmatprep.subr.mxu1 %v1050_v34  ;;  %v646_v39 = vld [vmem:[#allocation7 + $0x88] sm:$0xff] }
 0x1c4   :  { %1984 = vmatpush3.msra.mxu1 %v1050_v34  ;;  %v645_v34 = vld [vmem:[#allocation7 + $0x80] sm:$0xff] }
 0x1c5   :  { %1921 = vmatprep.mubr.f32.mxu1 %v992_v48  ;;  %1985 = vmatprep.subr.mxu1 %v1049_v40  ;;  %v648_v48 = vld [vmem:[#allocation7 + $0x98] sm:$0xff] }
 0x1c6   :  { %v872_v44 = vpop.permute.xlu1 %871  ;;  %1986 = vmatpush3.msra.mxu1 %v1049_v40  ;;  %v647_v40 = vld [vmem:[#allocation7 + $0x90] sm:$0xff] }
 0x1c7   :  { %v993_v46 = vmul.f32 %v2367_v63, %v872_v44  ;;  %1987 = vmatprep.subr.mxu1 %v1048_v41  ;;  %v650_v44 = vld [vmem:[#allocation7 + $0xa8] sm:$0xff] }
 0x1c8   :  { %1988 = vmatpush3.msra.mxu1 %v1048_v41  ;;  %v649_v41 = vld [vmem:[#allocation7 + $0xa0] sm:$0xff] }
 0x1c9   :  { %1922 = vmatmul.mubr.f32.gmra.mxu1 %v993_v46  ;;  %v651_v46 = vld [vmem:[#allocation7 + $0xb0] sm:$0xff] }
 0x1ca   :  { %v877_v53 = vpop.permute.xlu0 %876 }
 0x1cb   :  { %v994_v47 = vmul.f32 %v2370_v4, %v877_v53  ;;  %v652_v53 = vld [vmem:[#allocation7 + $0xb8] sm:$0xff] }
 0x1cd   :  { %1924 = vmatprep.mubr.f32.mxu1 %v994_v47  ;;  %v653_v47 = vld [vmem:[#allocation7 + $0xc0] sm:$0xff] }
 0x1ce   :  { %v882_v50 = vpop.permute.xlu1 %881 }
 0x1cf   :  { %v995_v51 = vmul.f32 %v2373_v9, %v882_v50  ;;  %v654_v50 = vld [vmem:[#allocation7 + $0xc8] sm:$0xff] }
 0x1d1   :  { %1925 = vmatmul.mubr.f32.gmra.mxu1 %v995_v51  ;;  %v655_v51 = vld [vmem:[#allocation7 + $0xd0] sm:$0xff] }
 0x1d2   :  { %v887_v58 = vpop.permute.xlu0 %886 }
 0x1d3   :  { %v996_v54 = vmul.f32 %v2376_v15, %v887_v58  ;;  %v656_v58 = vld [vmem:[#allocation7 + $0xd8] sm:$0xff] }
 0x1d5   :  { %1927 = vmatprep.mubr.f32.mxu1 %v996_v54  ;;  %v657_v54 = vld [vmem:[#allocation7 + $0xe0] sm:$0xff] }
 0x1d6   :  { %v892_v56 = vpop.permute.xlu1 %891 }
 0x1d7   :  { %v997_v57 = vmul.f32 %v2379_v21, %v892_v56  ;;  %v658_v56 = vld [vmem:[#allocation7 + $0xe8] sm:$0xff] }
 0x1d9   :  { %1928 = vmatmul.mubr.f32.gmra.mxu1 %v997_v57  ;;  %v659_v57 = vld [vmem:[#allocation7 + $0xf0] sm:$0xff] }
 0x1da   :  { %v897_v63 = vpop.permute.xlu0 %896 }
 0x1db   :  { %v998_v59 = vmul.f32 %v2382_v27, %v897_v63  ;;  %v660_v63 = vld [vmem:[#allocation7 + $0xf8] sm:$0xff] }
 0x1dd   :  { %1930 = vmatprep.mubr.f32.mxu1 %v998_v59 }
 0x1de   :  { %v902_v62 = vpop.permute.xlu1 %901 }
 0x1df   :  { %v999_v4 = vmul.f32 %v2385_v36, %v902_v62 }
 0x1e1   :  { %1931 = vmatmul.mubr.f32.gmra.mxu1 %v999_v4 }
 0x1e2   :  { %v907_v0 = vpop.permute.xlu0 %906 }
 0x1e3   :  { %v1000_v9 = vmul.f32 %v2388_v42, %v907_v0 }
 0x1e5   :  { %1933 = vmatprep.mubr.f32.mxu1 %v1000_v9 }
 0x1e6   :  { %v912_v1 = vpop.permute.xlu1 %911 }
 0x1e7   :  { %v1001_v15 = vmul.f32 %v2391_v49, %v912_v1 }
 0x1e9   :  { %1934 = vmatmul.mubr.f32.gmra.mxu1 %v1001_v15 }
 0x1ea   :  { %v917_v3 = vpop.permute.xlu0 %916 }
 0x1eb   :  { %v1002_v21 = vmul.f32 %v2394_v55, %v917_v3 }
 0x1ed   :  { %1936 = vmatprep.mubr.f32.mxu1 %v1002_v21 }
 0x1ee   :  { %v922_v10 = vpop.permute.xlu1 %921 }
 0x1ef   :  { %v1003_v27 = vmul.f32 %v2397_v61, %v922_v10 }
 0x1f1   :  { %1937 = vmatmul.mubr.f32.gmra.mxu1 %v1003_v27 }
 0x1f2   :  { %v927_v7 = vpop.permute.xlu0 %926 }
 0x1f3   :  { %v1004_v36 = vmul.f32 %v2403_v5, %v927_v7 }
 0x1f5   :  { %1939 = vmatprep.mubr.f32.mxu1 %v1004_v36 }
 0x1f6   :  { %v932_v17 = vpop.permute.xlu1 %931 }
 0x1f7   :  { %v1005_v42 = vmul.f32 %v2406_v12, %v932_v17 }
 0x1f9   :  { %1940 = vmatmul.mubr.f32.gmra.mxu1 %v1005_v42 }
 0x1fa   :  { %v937_v8 = vpop.permute.xlu0 %936 }
 0x1fb   :  { %v1006_v49 = vmul.f32 %v2409_v19, %v937_v8 }
 0x1fd   :  { %1942 = vmatprep.mubr.f32.mxu1 %v1006_v49 }
 0x1fe   :  { %v942_v2 = vpop.permute.xlu1 %941 }
 0x1ff   :  { %v1007_v55 = vmul.f32 %v2412_v26, %v942_v2 }
 0x201   :  { %1943 = vmatmul.mubr.f32.gmra.mxu1 %v1007_v55 }
 0x202   :  { %v947_v23 = vpop.permute.xlu0 %946 }
 0x203   :  { %v1008_v61 = vmul.f32 %v2415_v38, %v947_v23 }
 0x205   :  { %1945 = vmatprep.mubr.f32.mxu1 %v1008_v61 }
 0x206   :  { %v952_v11 = vpop.permute.xlu1 %951 }
 0x207   :  { %v1009_v5 = vmul.f32 %v2418_v45, %v952_v11 }
 0x209   :  { %1946 = vmatmul.mubr.f32.gmra.mxu1 %v1009_v5 }
 0x20a   :  { %v957_v13 = vpop.permute.xlu0 %956 }
 0x20b   :  { %v1010_v12 = vmul.f32 %v2421_v52, %v957_v13 }
 0x20d   :  { %1948 = vmatprep.mubr.f32.mxu1 %v1010_v12 }
 0x20e   :  { %v962_v16 = vpop.permute.xlu1 %961 }
 0x20f   :  { %v1011_v19 = vmul.f32 %v2424_v60, %v962_v16  ;;  %v2159_v60 = vld [vmem:[#allocation7 + $0x18] sm:$0xff] }
 0x211   :  { %1949 = vmatmul.mubr.f32.gmra.mxu1 %v1011_v19 }
 0x212   :  { %v967_v29 = vpop.permute.xlu0 %966 }
 0x213   :  { %v1012_v26 = vmul.f32 %v2427_v6, %v967_v29  ;;  %v2160_v6 = vld [vmem:[#allocation7 + $0x20] sm:$0xff] }
 0x215   :  { %1951 = vmatprep.mubr.f32.mxu1 %v1012_v26 }
 0x216   :  { %v972_v18 = vpop.permute.xlu1 %971 }
 0x217   :  { %v1013_v38 = vmul.f32 %v2430_v14, %v972_v18  ;;  %v634_v14 = vld [vmem:[#allocation7 + $0x28] sm:$0xff] }
 0x219   :  { %1952 = vmatmul.mubr.f32.gmra.mxu1 %v1013_v38 }
 0x21a   :  { %v977_v20 = vpop.permute.xlu0 %976 }
 0x21b   :  { %v1014_v45 = vmul.f32 %v2433_v24, %v977_v20  ;;  %v636_v24 = vld [vmem:[#allocation7 + $0x38] sm:$0xff] }
 0x21d   :  { %1954 = vmatprep.mubr.f32.mxu1 %v1014_v45 }
 0x21e   :  { %v982_v22 = vpop.permute.xlu1 %981 }
 0x21f   :  { %v1015_v52 = vmul.f32 %v2436_v35, %v982_v22  ;;  %v638_v35 = vld [vmem:[#allocation7 + $0x48] sm:$0xff]  ;;  %v2522_v22 = vld [vmem:[%s2588_s4] ss:$0 sm:$0xff]  ;;  %s2276_s4 = smov [#allocation12]  }
 0x220   :  { %s1606_s13 = sshll.u32 %s2276_s4, 4  ;;  %s1607_s13 = int_to_ptr.vmem [resolvable:$true] %s1606_s13 }
 0x221   :  { %1955 = vmatmul.mubr.f32.gmra.mxu1 %v1015_v52  ;;  %s2241_s14 = scalar_lea.vmem %s1607_s13, 4096  ;;  %p2246_p7 = scmp.lt.s32.totalorder %s1607_s13, %s1607_s13 }
 0x222   :  { %1989 = vmatprep.mubr.f32.mxu1 %v2336_v32  ;;  %v640_v32 = vld [vmem:[#allocation7 + $0x58] sm:$0xff]  ;;  %p2242_p6 = scmp.ne.s32.totalorder %s1607_s13, %s2241_s14  ;;  %p2247_p8 = scmp.lt.s32.totalorder %s2241_s14, %s2241_s14 }
 0x224   :  { %p2248_p9 = por %p2247_p8, %p2246_p7 }
 0x225   :  { %1990 = vmatmul.mubr.f32.vlgmr.msra.gmra.mxu1 %v2333_v30  ;;  %v641_v30 = vld [vmem:[#allocation7 + $0x60] sm:$0xff] }
 0x226   :  { %1992 = vmatprep.mubr.f32.mxu1 %v2331_v28  ;;  %v642_v28 = vld [vmem:[#allocation7 + $0x68] sm:$0xff]  ;;  %p2249_p10 = pnand %p2248_p9, %p2242_p6 }
 0x229   :  { %1993 = vmatmul.mubr.f32.gmra.mxu1 %v2159_v60 }
 0x22a   :  { %1995 = vmatprep.mubr.f32.mxu1 %v2160_v6 }
 0x22d   :  { %1996 = vmatmul.mubr.f32.gmra.mxu1 %v634_v14 }
 0x22e   :  { %1998 = vmatprep.mubr.f32.mxu1 %v635_v37 }
 0x231   :  { %1999 = vmatmul.mubr.f32.gmra.mxu1 %v636_v24 }
 0x232   :  { %2001 = vmatprep.mubr.f32.mxu1 %v637_v25 }
 0x235   :  { %2002 = vmatmul.mubr.f32.gmra.mxu1 %v638_v35 }
 0x236   :  { %2004 = vmatprep.mubr.f32.mxu1 %v639_v31 }
 0x239   :  { %2005 = vmatmul.mubr.f32.gmra.mxu1 %v640_v32 }
 0x23a   :  { %2007 = vmatprep.mubr.f32.mxu1 %v641_v30 }
 0x23d   :  { %2008 = vmatmul.mubr.f32.gmra.mxu1 %v642_v28 }
 0x23e   :  { %2010 = vmatprep.mubr.f32.mxu1 %v643_v33 }
 0x241   :  { %2011 = vmatmul.mubr.f32.gmra.mxu1 %v644_v43 }
 0x242   :  { %2013 = vmatprep.mubr.f32.mxu1 %v645_v34 }
 0x245   :  { %2014 = vmatmul.mubr.f32.gmra.mxu1 %v646_v39 }
 0x246   :  { %2016 = vmatprep.mubr.f32.mxu1 %v647_v40 }
 0x249   :  { %2017 = vmatmul.mubr.f32.gmra.mxu1 %v648_v48 }
 0x24a   :  { %2019 = vmatprep.mubr.f32.mxu1 %v649_v41 }
 0x24d   :  { %2020 = vmatmul.mubr.f32.gmra.mxu1 %v650_v44 }
 0x24e   :  { %2022 = vmatprep.mubr.f32.mxu1 %v651_v46 }
 0x251   :  { %2023 = vmatmul.mubr.f32.gmra.mxu1 %v652_v53 }
 0x252   :  { %2025 = vmatprep.mubr.f32.mxu1 %v653_v47 }
 0x255   :  { %2026 = vmatmul.mubr.f32.gmra.mxu1 %v654_v50 }
 0x256   :  { %2028 = vmatprep.mubr.f32.mxu1 %v655_v51 }
 0x259   :  { %2029 = vmatmul.mubr.f32.gmra.mxu1 %v656_v58 }
 0x25a   :  { %2031 = vmatprep.mubr.f32.mxu1 %v657_v54 }
 0x25d   :  { %2032 = vmatmul.mubr.f32.gmra.mxu1 %v658_v56 }
 0x25e   :  { %2034 = vmatprep.mubr.f32.mxu1 %v659_v57 }
 0x261   :  { %2035 = vmatmul.mubr.f32.gmra.mxu1 %v660_v63 }
 0x269   :  { %v1911_v59 = vpop.f32.mrf.mxu1 }
 0x26b   :  { %v1146_v62 = vpop.f32.mrf.mxu1 }
 0x271   :  { %v1914_v4 = vpop.f32.mrf.mxu1 }
 0x273   :  { %v1156_v0 = vpop.f32.mrf.mxu1 }
 0x279   :  { %v1917_v9 = vpop.f32.mrf.mxu1 }
 0x27b   :  { %v1166_v1 = vpop.f32.mrf.mxu1 }
 0x281   :  { %v1920_v15 = vpop.f32.mrf.mxu1 }
 0x283   :  { %v1176_v3 = vpop.f32.mrf.mxu1 }
 0x289   :  { %v1923_v21 = vpop.f32.mrf.mxu1 }
 0x28b   :  { %v1186_v10 = vpop.f32.mrf.mxu1 }
 0x291   :  { %v2475_v27 = vpop.f32.mrf.mxu1 }
 0x293   :  { %v2477_v7 = vpop.f32.mrf.mxu1 }
 0x299   :  { %v2479_v36 = vpop.f32.mrf.mxu1 }
 0x29b   :  { %v2481_v17 = vpop.f32.mrf.mxu1 }
 0x2a1   :  { %v2483_v42 = vpop.f32.mrf.mxu1 }
 0x2a3   :  { %v2485_v8 = vpop.f32.mrf.mxu1 }
 0x2a9   :  { %v2487_v49 = vpop.f32.mrf.mxu1 }
 0x2ab   :  { %v2489_v2 = vpop.f32.mrf.mxu1 }
 0x2b1   :  { %v2491_v55 = vpop.f32.mrf.mxu1 }
 0x2b3   :  { %v2493_v23 = vpop.f32.mrf.mxu1 }
 0x2b9   :  { %v2495_v61 = vpop.f32.mrf.mxu1 }
 0x2bb   :  { %v2497_v11 = vpop.f32.mrf.mxu1 }
 0x2c1   :  { %v2499_v5 = vpop.f32.mrf.mxu1 }
 0x2c3   :  { %v2501_v13 = vpop.f32.mrf.mxu1 }
 0x2c9   :  { %v2503_v12 = vpop.f32.mrf.mxu1 }
 0x2cb   :  { %v2505_v16 = vpop.f32.mrf.mxu1 }
 0x2d1   :  { %v2507_v19 = vpop.f32.mrf.mxu1 }
 0x2d3   :  { %v2509_v29 = vpop.f32.mrf.mxu1 }
 0x2d9   :  { %v2511_v26 = vpop.f32.mrf.mxu1 }
 0x2db   :  { %v2513_v18 = vpop.f32.mrf.mxu1 }
 0x2e1   :  { %v2515_v38 = vpop.f32.mrf.mxu1 }
 0x2e3   :  { %v2517_v20 = vpop.f32.mrf.mxu1 }
 0x2e5   :  { %v1991_v45 = vpop.f32.mrf.mxu1 }
 0x2e6   :  { %v1377_v52 = vadd.f32 %v1991_v45, %v1911_v59 }
 0x2e7   :  { %v1371_v60 = vpop.f32.mrf.mxu1 }
 0x2e8   :  { %v1538_v6 = vadd.f32 %v2522_v22, %v1377_v52  ;;  %v1372_v14 = vadd.f32 %v1371_v60, %v1146_v62 }
 0x2e9   :  { %v1994_v37 = vpop.f32.mrf.mxu1 }
 0x2ea   :  { %1570 = vst [vmem:[#allocation12 + $0x8] sm:$0xff] %v1538_v6  ;;  %v1537_v24 = vadd.f32 %v2522_v22, %v1372_v14  ;;  %v1387_v25 = vadd.f32 %v1994_v37, %v1914_v4 }
 0x2eb   :  { %v1381_v35 = vpop.f32.mrf.mxu1 }
 0x2ec   :  { %1569 = vst [vmem:[#allocation12] sm:$0xff] %v1537_v24  ;;  %v1540_v31 = vadd.f32 %v2522_v22, %v1387_v25  ;;  %v1382_v32 = vadd.f32 %v1381_v35, %v1156_v0 }
 0x2ed   :  { %v1997_v30 = vpop.f32.mrf.mxu1 }
 0x2ee   :  { %1572 = vst [vmem:[#allocation12 + $0x18] sm:$0xff] %v1540_v31  ;;  %v1539_v28 = vadd.f32 %v2522_v22, %v1382_v32  ;;  %v1397_v33 = vadd.f32 %v1997_v30, %v1917_v9 }
 0x2ef   :  { %v1391_v43 = vpop.f32.mrf.mxu1 }
 0x2f0   :  { %1571 = vst [vmem:[#allocation12 + $0x10] sm:$0xff] %v1539_v28  ;;  %v1542_v34 = vadd.f32 %v2522_v22, %v1397_v33  ;;  %v1392_v39 = vadd.f32 %v1391_v43, %v1166_v1 }
 0x2f1   :  { %v2000_v40 = vpop.f32.mrf.mxu1 }
 0x2f2   :  { %1574 = vst [vmem:[#allocation12 + $0x28] sm:$0xff] %v1542_v34  ;;  %v1541_v48 = vadd.f32 %v2522_v22, %v1392_v39  ;;  %v1407_v41 = vadd.f32 %v2000_v40, %v1920_v15 }
 0x2f3   :  { %v1401_v44 = vpop.f32.mrf.mxu1 }
 0x2f4   :  { %1573 = vst [vmem:[#allocation12 + $0x20] sm:$0xff] %v1541_v48  ;;  %v1544_v46 = vadd.f32 %v2522_v22, %v1407_v41  ;;  %v1402_v53 = vadd.f32 %v1401_v44, %v1176_v3 }
 0x2f5   :  { %v2003_v47 = vpop.f32.mrf.mxu1 }
 0x2f6   :  { %1576 = vst [vmem:[#allocation12 + $0x38] sm:$0xff] %v1544_v46  ;;  %v1543_v50 = vadd.f32 %v2522_v22, %v1402_v53  ;;  %v1417_v51 = vadd.f32 %v2003_v47, %v1923_v21 }
 0x2f7   :  { %v1411_v58 = vpop.f32.mrf.mxu1 }
 0x2f8   :  { %1575 = vst [vmem:[#allocation12 + $0x30] sm:$0xff] %v1543_v50  ;;  %v1546_v54 = vadd.f32 %v2522_v22, %v1417_v51  ;;  %v1412_v56 = vadd.f32 %v1411_v58, %v1186_v10 }
 0x2f9   :  { %v2006_v57 = vpop.f32.mrf.mxu1 }
 0x2fa   :  { %1578 = vst [vmem:[#allocation12 + $0x48] sm:$0xff] %v1546_v54  ;;  %v1545_v63 = vadd.f32 %v2522_v22, %v1412_v56  ;;  %v1427_v59 = vadd.f32 %v2006_v57, %v2475_v27 }
 0x2fb   :  { %v1421_v62 = vpop.f32.mrf.mxu1 }
 0x2fc   :  { %1577 = vst [vmem:[#allocation12 + $0x40] sm:$0xff] %v1545_v63  ;;  %v1548_v4 = vadd.f32 %v2522_v22, %v1427_v59  ;;  %v1422_v0 = vadd.f32 %v1421_v62, %v2477_v7 }
 0x2fd   :  { %v2009_v9 = vpop.f32.mrf.mxu1 }
 0x2fe   :  { %1580 = vst [vmem:[#allocation12 + $0x58] sm:$0xff] %v1548_v4  ;;  %v1547_v1 = vadd.f32 %v2522_v22, %v1422_v0  ;;  %v1437_v15 = vadd.f32 %v2009_v9, %v2479_v36 }
 0x2ff   :  { %v1431_v3 = vpop.f32.mrf.mxu1 }
 0x300   :  { %1579 = vst [vmem:[#allocation12 + $0x50] sm:$0xff] %v1547_v1  ;;  %v1550_v21 = vadd.f32 %v2522_v22, %v1437_v15  ;;  %v1432_v10 = vadd.f32 %v1431_v3, %v2481_v17 }
 0x301   :  { %v2012_v45 = vpop.f32.mrf.mxu1 }
 0x302   :  { %1582 = vst [vmem:[#allocation12 + $0x68] sm:$0xff] %v1550_v21  ;;  %v1549_v27 = vadd.f32 %v2522_v22, %v1432_v10  ;;  %v1447_v52 = vadd.f32 %v2012_v45, %v2483_v42 }
 0x303   :  { %v1441_v60 = vpop.f32.mrf.mxu1 }
 0x304   :  { %1581 = vst [vmem:[#allocation12 + $0x60] sm:$0xff] %v1549_v27  ;;  %v1552_v7 = vadd.f32 %v2522_v22, %v1447_v52  ;;  %v1442_v6 = vadd.f32 %v1441_v60, %v2485_v8 }
 0x305   :  { %v2015_v14 = vpop.f32.mrf.mxu1 }
 0x306   :  { %1584 = vst [vmem:[#allocation12 + $0x78] sm:$0xff] %v1552_v7  ;;  %v1551_v36 = vadd.f32 %v2522_v22, %v1442_v6  ;;  %v1457_v37 = vadd.f32 %v2015_v14, %v2487_v49 }
 0x307   :  { %v1451_v24 = vpop.f32.mrf.mxu1 }
 0x308   :  { %1583 = vst [vmem:[#allocation12 + $0x70] sm:$0xff] %v1551_v36  ;;  %v1554_v17 = vadd.f32 %v2522_v22, %v1457_v37  ;;  %v1452_v25 = vadd.f32 %v1451_v24, %v2489_v2 }
 0x309   :  { %v2018_v35 = vpop.f32.mrf.mxu1 }
 0x30a   :  { %1586 = vst [vmem:[#allocation12 + $0x88] sm:$0xff] %v1554_v17  ;;  %v1553_v42 = vadd.f32 %v2522_v22, %v1452_v25  ;;  %v1467_v31 = vadd.f32 %v2018_v35, %v2491_v55 }
 0x30b   :  { %v1461_v32 = vpop.f32.mrf.mxu1 }
 0x30c   :  { %1585 = vst [vmem:[#allocation12 + $0x80] sm:$0xff] %v1553_v42  ;;  %v1556_v8 = vadd.f32 %v2522_v22, %v1467_v31  ;;  %v1462_v30 = vadd.f32 %v1461_v32, %v2493_v23 }
 0x30d   :  { %v2021_v28 = vpop.f32.mrf.mxu1 }
 0x30e   :  { %1588 = vst [vmem:[#allocation12 + $0x98] sm:$0xff] %v1556_v8  ;;  %v1555_v49 = vadd.f32 %v2522_v22, %v1462_v30  ;;  %v1477_v33 = vadd.f32 %v2021_v28, %v2495_v61 }
 0x30f   :  { %v1471_v43 = vpop.f32.mrf.mxu1 }
 0x310   :  { %1587 = vst [vmem:[#allocation12 + $0x90] sm:$0xff] %v1555_v49  ;;  %v1558_v2 = vadd.f32 %v2522_v22, %v1477_v33  ;;  %v1472_v34 = vadd.f32 %v1471_v43, %v2497_v11 }
 0x311   :  { %v2024_v39 = vpop.f32.mrf.mxu1 }
 0x312   :  { %1590 = vst [vmem:[#allocation12 + $0xa8] sm:$0xff] %v1558_v2  ;;  %v1557_v55 = vadd.f32 %v2522_v22, %v1472_v34  ;;  %v1487_v40 = vadd.f32 %v2024_v39, %v2499_v5 }
 0x313   :  { %v1481_v48 = vpop.f32.mrf.mxu1 }
 0x314   :  { %1589 = vst [vmem:[#allocation12 + $0xa0] sm:$0xff] %v1557_v55  ;;  %v1560_v23 = vadd.f32 %v2522_v22, %v1487_v40  ;;  %v1482_v41 = vadd.f32 %v1481_v48, %v2501_v13 }
 0x315   :  { %v2027_v44 = vpop.f32.mrf.mxu1 }
 0x316   :  { %1592 = vst [vmem:[#allocation12 + $0xb8] sm:$0xff] %v1560_v23  ;;  %v1559_v61 = vadd.f32 %v2522_v22, %v1482_v41  ;;  %v1497_v46 = vadd.f32 %v2027_v44, %v2503_v12 }
 0x317   :  { %v1491_v53 = vpop.f32.mrf.mxu1 }
 0x318   :  { %1591 = vst [vmem:[#allocation12 + $0xb0] sm:$0xff] %v1559_v61  ;;  %v1562_v11 = vadd.f32 %v2522_v22, %v1497_v46  ;;  %v1492_v47 = vadd.f32 %v1491_v53, %v2505_v16 }
 0x319   :  { %v2030_v50 = vpop.f32.mrf.mxu1 }
 0x31a   :  { %1594 = vst [vmem:[#allocation12 + $0xc8] sm:$0xff] %v1562_v11  ;;  %v1561_v5 = vadd.f32 %v2522_v22, %v1492_v47  ;;  %v1507_v51 = vadd.f32 %v2030_v50, %v2507_v19 }
 0x31b   :  { %v1501_v58 = vpop.f32.mrf.mxu1 }
 0x31c   :  { %1593 = vst [vmem:[#allocation12 + $0xc0] sm:$0xff] %v1561_v5  ;;  %v1564_v13 = vadd.f32 %v2522_v22, %v1507_v51  ;;  %v1502_v54 = vadd.f32 %v1501_v58, %v2509_v29 }
 0x31d   :  { %v2033_v56 = vpop.f32.mrf.mxu1 }
 0x31e   :  { %1596 = vst [vmem:[#allocation12 + $0xd8] sm:$0xff] %v1564_v13  ;;  %v1563_v12 = vadd.f32 %v2522_v22, %v1502_v54  ;;  %v1517_v57 = vadd.f32 %v2033_v56, %v2511_v26 }
 0x31f   :  { %v1511_v63 = vpop.f32.mrf.mxu1 }
 0x320   :  { %1595 = vst [vmem:[#allocation12 + $0xd0] sm:$0xff] %v1563_v12  ;;  %v1566_v16 = vadd.f32 %v2522_v22, %v1517_v57  ;;  %v1512_v59 = vadd.f32 %v1511_v63, %v2513_v18 }
 0x321   :  { %v2036_v62 = vpop.f32.mrf.mxu1 }
 0x322   :  { %1598 = vst [vmem:[#allocation12 + $0xe8] sm:$0xff] %v1566_v16  ;;  %v1565_v19 = vadd.f32 %v2522_v22, %v1512_v59  ;;  %v1527_v4 = vadd.f32 %v2036_v62, %v2515_v38 }
 0x323   :  { %v1521_v0 = vpop.f32.mrf.mxu1 }
 0x324   :  { %1597 = vst [vmem:[#allocation12 + $0xe0] sm:$0xff] %v1565_v19  ;;  %v1568_v29 = vadd.f32 %v2522_v22, %v1527_v4  ;;  %v1522_v26 = vadd.f32 %v1521_v0, %v2517_v20 }
 0x326   :  { %1600 = vst [vmem:[#allocation12 + $0xf8] sm:$0xff] %v1568_v29  ;;  %v1567_v9 = vadd.f32 %v2522_v22, %v1522_v26 }
 0x328   :  { %1599 = vst [vmem:[#allocation12 + $0xf0] sm:$0xff] %v1567_v9 }
 0x329   :  { %2252 = shalt.err (!%p2249_p10)
}
 0x32a   :  { %1612 = dma.vmem_to_hbm [thread:$0]  %s1607_s13, 4096, %s2589_s5, [#allocation6], %s2271_s23, %s2271_s23, %s2272_s24  }
 0x32b   :  { %2267 = dma.done.wait [#allocation6], 4096  }
 0x32c   :  { %2268 = vsyncadd [#allocation6], 4294963200 }
 0x32d   :  { %1616 = vsyncpa [#allocation5], 1 }
 0x32e   :  { %1617 = vsyncpa [#allocation8], 1 }
 0x32f   :  { %1618 = vsyncpa [#allocation11], 1 }
 0x330   :  { %1619 = vsyncpa [#allocation6], 1 }

</bundles_post_ra>
